<compile_context>
chip_gen: v7x
topology: tpu7x:2x2x1
jax: 0.10.0
libtpu: 0.0.40
codegen_flags: <defaults>
</compile_context>

<pallas_src>
import jax
import jax.numpy as jnp
from jax.experimental import pallas as pl
from jax.experimental.pallas import tpu as pltpu


SUBLANES = 8      # f32 vreg sublanes
LANES = 128       # vreg lanes

# Lane-axis tile for the gridded path.  Per grid step this moves
#   2 inputs * (2*8*T*4 B) + 1 output * (8*T*4 B) = 160*T bytes ≈ 5 MiB at T=32768,
# comfortably amortizing the ~0.35 us fixed per-step overhead on all of
# v5e/v6e/v7x, while the double-buffered VMEM footprint
# (2 inputs * 2 bufs * 2 MiB + 2 * 1 MiB output ≈ 10 MiB) stays well under
# v7x's 32 MiB default scoped VMEM (64 MiB physical).
MAX_TILE_LANES = 32768

# Below this many lanes (= 8*4096 = 32768 controllers) the op is launch-bound;
# use one grid-less call (blocks are <= 256 KiB, trivially VMEM-resident).
SINGLE_TILE_MAX_LANES = 4096


def _round_up(a, b):
    return pl.cdiv(a, b) * b


def _layout(n):
    """Dense (8, lanes) layout for n controllers.

    Returns (n_pad, lanes, tile, grid_n); grid_n == 0 means grid-less single tile.
    """
    lanes_min = pl.cdiv(n, SUBLANES)
    if lanes_min <= SINGLE_TILE_MAX_LANES:
        lanes = max(LANES, _round_up(lanes_min, LANES))
        return SUBLANES * lanes, lanes, lanes, 0
    # Gridded path: at least 2 steps so v7x's two TensorCores both get work;
    # tile rounded to 128 lanes so padding stays < grid_n*128 lanes (never a
    # whole wasted tile of DMA + compute).
    grid_n = max(2, pl.cdiv(lanes_min, MAX_TILE_LANES))
    tile = _round_up(pl.cdiv(lanes_min, grid_n), LANES)
    lanes = tile * grid_n
    return SUBLANES * lanes, lanes, tile, grid_n


def multipi_kernel(x_ref, w_ref, y_ref):
    # x_ref, w_ref: (2, 8, T) dense planes; y_ref: (8, T).
    # Pure VPU: 2 vmul + 1 vadd on fully dense vregs, unmasked full-lane vst.
    # No XLU reduce, no MXU, no masked partial stores.
    y_ref[...] = x_ref[0] * w_ref[0] + x_ref[1] * w_ref[1]


def prepare_weights(weights):
    """One-time transform of PyTorch-layout weights (N, 2) into the packed
    (2, 8, lanes) dense-plane layout the kernel consumes.

    In a real module this is done once at parameter-load time (the packed
    array IS the stored parameter), never on the per-call path.
    """
    n = weights.shape[0]
    n_pad, lanes, _, _ = _layout(n)
    w = jnp.asarray(weights, jnp.float32)
    if n_pad != n:
        w = jnp.pad(w, ((0, n_pad - n), (0, 0)))
    # (N_pad, 2) -> (2, N_pad) -> (2, 8, lanes):
    # plane 0 = per-pair weight 0, plane 1 = per-pair weight 1.
    return w.T.reshape(2, SUBLANES, lanes)


def multipi_forward(x, w_packed, n):
    """x: (B, 2*N) f32 (only x[0] used; interleaved pairs as in the torch
    module); w_packed: output of prepare_weights(); returns (N,) f32."""
    n_pad, lanes, tile, grid_n = _layout(n)
    assert w_packed.shape == (2, SUBLANES, lanes), "w_packed/layout mismatch"

    # ---- wrapper-side layout plumbing (never inside the kernel) -----------
    # De-interleave x[0]'s pairs into two dense planes.  The reshapes are
    # free (contiguous); pad+transpose is a single XLA copy pass.
    # TODO(synk): if the upstream producer stored x de-interleaved as (2, N),
    # this whole block (and its extra HBM pass) disappears.
    x_pairs = x[0].reshape(n, 2)
    if n_pad != n:
        # Zero pads multiply to zero and are sliced off below.
        x_pairs = jnp.pad(x_pairs, ((0, n_pad - n), (0, 0)))
    x_planes = x_pairs.T.reshape(2, SUBLANES, lanes)

    out_shape = jax.ShapeDtypeStruct((SUBLANES, lanes), jnp.float32)

    if grid_n == 0:
        # Launch-bound regime: single grid-less call (no degenerate 1-long
        # grid, no per-step overhead); whole arrays live in VMEM.
        y8 = pl.pallas_call(multipi_kernel, out_shape=out_shape)(
            x_planes, w_packed)
    else:
        # Bandwidth regime: tile the lane axis, >= 2 parallel steps so both
        # v7x TensorCores are engaged (harmless on v5e/v6e).
        y8 = pl.pallas_call(
            multipi_kernel,
            out_shape=out_shape,
            grid=(grid_n,),
            in_specs=[
                pl.BlockSpec((2, SUBLANES, tile), lambda i: (0, 0, i)),
                pl.BlockSpec((2, SUBLANES, tile), lambda i: (0, 0, i)),
            ],
            out_specs=pl.BlockSpec((SUBLANES, tile), lambda i: (0, i)),
            compiler_params=pltpu.CompilerParams(
                dimension_semantics=("parallel",),
            ),
        )(x_planes, w_packed)

    # (8, lanes) -> flat -> first N entries: matches torch.cat of the N
    # scalar Linear outputs.
    return y8.reshape(-1)[:n]


def reference_forward(x, weights):
    """Pure-JAX reference mirroring the PyTorch loop exactly (small N only)."""
    n = weights.shape[0]
    outs = []
    for i in range(n):
        pair = x[0, 2 * i:2 * (i + 1)]          # (2,)
        outs.append(weights[i] @ pair)          # Linear(2,1,bias=False)
    return jnp.stack(outs)                      # (N,)


if __name__ == "__main__":
    key = jax.random.PRNGKey(0)
    kx, kw, kx2, kw2 = jax.random.split(key, 4)
    bound = 1.0 / jnp.sqrt(2.0)   # mimics PyTorch Linear(2,1) init scale

    # ---- module-sized case: controllers_number = 8, batch = 2 -------------
    n_small = 8
    batch = 2
    x = jax.random.normal(kx, (batch, 2 * n_small), dtype=jnp.float32)
    w = jax.random.uniform(kw, (n_small, 2), dtype=jnp.float32,
                           minval=-bound, maxval=bound)

    w_packed = prepare_weights(w)                # one-time, off the hot path
    y = jax.block_until_ready(multipi_forward(x, w_packed, n_small))

    y_ref = reference_forward(x, w)
    assert y.shape == (n_small,)
    assert jnp.allclose(y, y_ref, atol=1e-6, rtol=1e-6)

    # ---- larger bank: exercises the tiled / dual-TensorCore grid path -----
    n_big = 40000                                # lanes_min=5000 -> grid_n=2
    xb = jax.random.normal(kx2, (1, 2 * n_big), dtype=jnp.float32)
    wb = jax.random.uniform(kw2, (n_big, 2), dtype=jnp.float32,
                            minval=-bound, maxval=bound)
    wb_packed = prepare_weights(wb)
    yb = jax.block_until_ready(multipi_forward(xb, wb_packed, n_big))

    yb_ref = jnp.sum(xb[0].reshape(n_big, 2) * wb, axis=-1)
    assert yb.shape == (n_big,)
    assert jnp.allclose(yb, yb_ref, atol=1e-5, rtol=1e-5)

    print("KERNEL_OK")
</pallas_src>

<mosaic_0001>
module attributes {stable_mosaic.version = 11 : i64} {
  func.func @multipi_kernel(%arg0: memref<2x8x128xf32, #tpu.memory_space<vmem>>, %arg1: memref<2x8x128xf32, #tpu.memory_space<vmem>>, %arg2: memref<8x128xf32, #tpu.memory_space<vmem>>) attributes {dimension_semantics = [], scalar_prefetch = 0 : i64, scratch_operands = 0 : i64, tpu.core_type = #tpu.core_type<tc>} {
    %c0 = arith.constant 0 : index
    %c0_0 = arith.constant 0 : index
    %c0_1 = arith.constant 0 : index
    %0 = vector.load %arg0[%c0, %c0_0, %c0_1] : memref<2x8x128xf32, #tpu.memory_space<vmem>>, vector<1x8x128xf32>
    %1 = vector.shape_cast %0 : vector<1x8x128xf32> to vector<8x128xf32>
    %c0_2 = arith.constant 0 : index
    %c0_3 = arith.constant 0 : index
    %c0_4 = arith.constant 0 : index
    %2 = vector.load %arg1[%c0_2, %c0_3, %c0_4] : memref<2x8x128xf32, #tpu.memory_space<vmem>>, vector<1x8x128xf32>
    %3 = vector.shape_cast %2 : vector<1x8x128xf32> to vector<8x128xf32>
    %4 = arith.mulf %1, %3 : vector<8x128xf32>
    %c1 = arith.constant 1 : index
    %c0_5 = arith.constant 0 : index
    %c0_6 = arith.constant 0 : index
    %5 = vector.load %arg0[%c1, %c0_5, %c0_6] : memref<2x8x128xf32, #tpu.memory_space<vmem>>, vector<1x8x128xf32>
    %6 = vector.shape_cast %5 : vector<1x8x128xf32> to vector<8x128xf32>
    %c1_7 = arith.constant 1 : index
    %c0_8 = arith.constant 0 : index
    %c0_9 = arith.constant 0 : index
    %7 = vector.load %arg1[%c1_7, %c0_8, %c0_9] : memref<2x8x128xf32, #tpu.memory_space<vmem>>, vector<1x8x128xf32>
    %8 = vector.shape_cast %7 : vector<1x8x128xf32> to vector<8x128xf32>
    %9 = arith.mulf %6, %8 : vector<8x128xf32>
    %10 = arith.addf %4, %9 : vector<8x128xf32>
    %c0_10 = arith.constant 0 : index
    %c0_11 = arith.constant 0 : index
    %11 = vector.load %arg2[%c0_10, %c0_11] : memref<8x128xf32, #tpu.memory_space<vmem>>, vector<8x128xf32>
    tpu.vector_store %arg2[%c0_10, %c0_11], %10 {strides = array<i32>} : memref<8x128xf32, #tpu.memory_space<vmem>>, vector<8x128xf32>,
    return
  }
}

</mosaic_0001>

<bundles_post_ra>
// kernel: tpu_custom_call.1
= control target key start
LH: loop header
LB: loop body
LE: loop exit
PB: predicated region body
PF: predicated region fallthrough
CT: control target
= control target key end

     0   :  { %7 = vsyncpa [#allocation3], 0  ;;  %s199_s0 = inlined_call_operand.hbm [shape: f32[2,8,128], index: 0, kind: input, shape index: {}]   ;;  %s200_s1 = inlined_call_operand.hbm [shape: f32[2,8,128], index: 1, kind: input, shape index: {}]   ;;  %s201_s2 = inlined_call_operand.hbm [shape: f32[8,128], index: 2, kind: output, shape index: {}]  }
   0x1   :  { %8 = vsyncpa [#allocation6], 0 }
   0x2   :  { %9 = vsyncpa [#allocation4], 0  ;;  %s143_s9 = smov [#allocation2]   ;;  %s71_s13 = scalar_lea.hbm %s199_s0, 256 }
   0x3   :  { %s15_s10 = sshll.u32 %s143_s9, 4  ;;  %p72_p0 = scmp.ne.s32.totalorder %s199_s0, %s71_s13  ;;  %s16_s10 = int_to_ptr.vmem [resolvable:$true] %s15_s10 }
   0x4   :  { %p75_p1 = scmp.lt.u32.totalorder %s71_s13, %s199_s0 }
   0x6   :  { %p77_p2 = pnand %p75_p1, %p72_p0 }
   0x8   :  { %80 = shalt.err (!%p77_p2)
}
   0x9   :  { %s81_s18 = scalar_lea.vmem %s16_s10, 256  ;;  %p86_p4 = scmp.lt.s32.totalorder %s16_s10, %s16_s10 }
   0xa   :  { %p82_p3 = scmp.ne.s32.totalorder %s16_s10, %s81_s18  ;;  %p87_p5 = scmp.lt.s32.totalorder %s81_s18, %s81_s18 }
   0xc   :  { %p88_p6 = por %p87_p5, %p86_p4 }
   0xe   :  { %p89_p7 = pnand %p88_p6, %p82_p3 }
  0x10   :  { %92 = shalt.err (!%p89_p7)
}
  0x11   :  { %s144_s19 = smov 128   ;;  %s145_s20 = smov 8  }
  0x12   :  { %21 = dma.hbm_to_vmem [thread:$0]  %s199_s0, 256, %s16_s10, [#allocation3], %s144_s19, %s144_s19, %s145_s20  }
  0x13   :  { %s146_s23 = smov [#allocation5]   ;;  %s93_s27 = scalar_lea.hbm %s200_s1, 256 }
  0x14   :  { %s27_s24 = sshll.u32 %s146_s23, 4  ;;  %p94_p8 = scmp.ne.s32.totalorder %s200_s1, %s93_s27  ;;  %s28_s24 = int_to_ptr.vmem [resolvable:$true] %s27_s24 }
  0x15   :  { %p97_p9 = scmp.lt.u32.totalorder %s93_s27, %s200_s1 }
  0x17   :  { %p99_p10 = pnand %p97_p9, %p94_p8 }
  0x19   :  { %102 = shalt.err (!%p99_p10)
}
  0x1a   :  { %s103_s4 = scalar_lea.vmem %s28_s24, 256  ;;  %p108_p12 = scmp.lt.s32.totalorder %s28_s24, %s28_s24 }
  0x1b   :  { %p104_p11 = scmp.ne.s32.totalorder %s28_s24, %s103_s4  ;;  %p109_p13 = scmp.lt.s32.totalorder %s103_s4, %s103_s4 }
  0x1d   :  { %p110_p0 = por %p109_p13, %p108_p12 }
  0x1f   :  { %p111_p1 = pnand %p110_p0, %p104_p11 }
  0x21   :  { %114 = shalt.err (!%p111_p1)
}
  0x22   :  { %33 = dma.hbm_to_vmem [thread:$0]  %s200_s1, 256, %s28_s24, [#allocation6], %s144_s19, %s144_s19, %s145_s20  }
  0x23   :  { %137 = dma.done.wait [#allocation3], 256  }
  0x24   :  { %138 = vsyncadd [#allocation3], 4294967040 }
  0x25   :  { %139 = dma.done.wait [#allocation6], 256  }
  0x26   :  { %140 = vsyncadd [#allocation6], 4294967040  ;;  %v40_v0 = vld [vmem:[#allocation2] sm:$0xff]  ;;  %v41_v1 = vld [vmem:[#allocation5] sm:$0xff]  ;;  %s147_s6 = smov [#allocation7]  }
  0x27   :  { %v44_v2 = vld [vmem:[#allocation2 + $0x8] sm:$0xff]  ;;  %v42_v3 = vmul.f32 %v41_v1, %v40_v0  ;;  %v46_v4 = vld [vmem:[#allocation5 + $0x8] sm:$0xff]  ;;  %s56_s7 = sshll.u32 %s147_s6, 4  ;;  %s57_s7 = int_to_ptr.vmem [resolvable:$true] %s56_s7 }
  0x28   :  { %v47_v5 = vmul.f32 %v46_v4, %v44_v2  ;;  %s115_s8 = scalar_lea.vmem %s57_s7, 128  ;;  %p120_p3 = scmp.lt.s32.totalorder %s57_s7, %s57_s7 }
  0x29   :  { %p116_p2 = scmp.ne.s32.totalorder %s57_s7, %s115_s8  ;;  %p121_p4 = scmp.lt.s32.totalorder %s115_s8, %s115_s8 }
  0x2a   :  { %v48_v6 = vadd.f32 %v47_v5, %v42_v3 }
  0x2b   :  { %p122_p5 = por %p121_p4, %p120_p3 }
  0x2c   :  { %49 = vst [vmem:[#allocation7] sm:$0xff] %v48_v6 }
  0x2d   :  { %p123_p6 = pnand %p122_p5, %p116_p2 }
  0x2f   :  { %126 = shalt.err (!%p123_p6)
}
  0x30   :  { %s127_s10 = scalar_lea.hbm %s201_s2, 128 }
  0x31   :  { %p128_p7 = scmp.ne.s32.totalorder %s201_s2, %s127_s10  ;;  %p131_p8 = scmp.lt.u32.totalorder %s127_s10, %s201_s2 }
  0x33   :  { %p133_p9 = pnand %p131_p8, %p128_p7 }
  0x35   :  { %136 = shalt.err (!%p133_p9)
}
  0x36   :  { %59 = dma.vmem_to_hbm [thread:$0]  %s57_s7, 128, %s201_s2, [#allocation4]  }
  0x37   :  { %141 = dma.done.wait [#allocation4], 128  }
  0x38   :  { %142 = vsyncadd [#allocation4], 4294967168 }
  0x39   :  { %63 = vsyncpa [#allocation3], 1 }
  0x3a   :  { %64 = vsyncpa [#allocation6], 1 }
  0x3b   :  { %65 = vsyncpa [#allocation4], 1 }

</bundles_post_ra>
